<compile_context>
chip_gen: v7x
topology: tpu7x:2x2x1
jax: 0.10.0
libtpu: 0.0.40
codegen_flags: <defaults>
</compile_context>

<pallas_src>
import jax
import jax.numpy as jnp
from jax.experimental import pallas as pl
from jax.experimental.pallas import tpu as pltpu


# ----------------------------------------------------------------------------
# Tile selection: largest query tile that divides HW and keeps the
# double-buffered bf16 attn block (2 * heads * tq * HW * 2B) under a
# v7x-safe VMEM budget, while giving >1 pipeline step when possible.
# ----------------------------------------------------------------------------
def _pick_tq(HW, heads, budget_bytes=8 * 1024 * 1024):
    for cand in (512, 256, 128, 64, 32, 16, 8):
        if cand < HW and HW % cand == 0 and 2 * heads * cand * HW * 2 <= budget_bytes:
            return cand
    return HW  # tiny HW: single block (block dims == full array dims)


# ----------------------------------------------------------------------------
# Kernel: grid = (batch, query-tile).
# ----------------------------------------------------------------------------
def _make_aggregate_kernel(heads, dim, dim_head, use_project, tq):
    def body(attn_ref, fmap_ref, w_ref, out_ref, vw_ref):
        # attn_ref : (heads, tq, HW)   bf16  -- query-row tile
        # fmap_ref : (HW, dim)         f32   -- whole batch element (stays resident)
        # w_ref    : (dim, n_total)    bf16  -- folded to_v (+ project + gamma) weight
        # out_ref  : (tq, dim)
        # vw_ref   : (HW, n_total)     bf16  -- scratch: fmap @ W, computed at q == 0
        q = pl.program_id(1)

        @pl.when(q == 0)
        def _():
            # Stage 1: one wide matmul over all heads (fills the 256-wide MXU).
            vw_ref[...] = jnp.dot(
                fmap_ref[...].astype(jnp.bfloat16), w_ref[...],
                preferred_element_type=jnp.float32).astype(jnp.bfloat16)

        row0 = pl.multiple_of(q * tq, tq)
        fmap_tile = fmap_ref[pl.ds(row0, tq), :]          # (tq, dim) f32 residual

        if use_project:
            # project folded into W: each head's term is full-width; sum in f32.
            acc = fmap_tile
            for h in range(heads):
                acc = acc + jnp.dot(attn_ref[h],
                                    vw_ref[:, h * dim:(h + 1) * dim],
                                    preferred_element_type=jnp.float32)
            out_ref[...] = acc.astype(out_ref.dtype)
        else:
            # no project (dim == heads*dim_head): each head owns a lane slice.
            for h in range(heads):
                lo, hi = h * dim_head, (h + 1) * dim_head
                agg = jnp.dot(attn_ref[h], vw_ref[:, lo:hi],
                              preferred_element_type=jnp.float32)
                out_ref[:, lo:hi] = (fmap_tile[:, lo:hi] + agg).astype(out_ref.dtype)

    return body


# ----------------------------------------------------------------------------
# Wrapper: PyTorch-style layouts in/out (attn (B,heads,HW,HW), fmap NCHW).
# ----------------------------------------------------------------------------
def aggregate_pallas(attn, fmap, params, *, heads):
    B, dim, H, W = fmap.shape
    HW = H * W
    wv = params["wv"].astype(jnp.float32)                 # (dim, inner_dim)
    inner_dim = wv.shape[1]
    dim_head = inner_dim // heads
    gamma = jnp.reshape(params["gamma"], ()).astype(jnp.float32)
    wp = params.get("wp")
    use_project = wp is not None
    if not use_project:
        assert inner_dim == dim, (
            "Without a project conv the residual requires inner_dim == dim")

    # Fold project (if any) and gamma into the to_v weight, in f32; one bf16 cast.
    if use_project:
        wv3 = wv.reshape(dim, heads, dim_head)                       # (dim, h, dh)
        wp3 = wp.astype(jnp.float32).reshape(heads, dim_head, dim)   # (h, dh, dim)
        w_fold = jnp.einsum('ihd,hdo->iho', wv3, wp3,
                            precision=jax.lax.Precision.HIGHEST) * gamma
        n_per_head = dim
        w_all = w_fold.reshape(dim, heads * dim)                     # (dim, heads*dim)
    else:
        n_per_head = dim_head
        w_all = wv * gamma                                           # (dim, inner_dim)
    n_total = heads * n_per_head
    w_all = w_all.astype(jnp.bfloat16)

    # attn dominates HBM traffic: ingest in bf16 (ideally the upstream softmax
    # already emits bf16; this cast is a no-op in that case).
    if attn.dtype != jnp.bfloat16:
        attn = attn.astype(jnp.bfloat16)

    # NCHW -> (B, HW, C): channels land on the 128-lane axis.
    # TODO(synk): drop these boundary transposes if the surrounding network can
    # carry NHWC end-to-end (pure layout plumbing, one HBM round-trip each).
    fmap_flat = jnp.transpose(fmap, (0, 2, 3, 1)).reshape(B, HW, dim)

    tq = _pick_tq(HW, heads)
    nq = HW // tq

    flops = 2 * B * (HW * dim * n_total + heads * HW * HW * n_per_head)
    bytes_accessed = (B * heads * HW * HW * 2        # attn (bf16)
                      + B * HW * dim * 4             # fmap in (f32)
                      + dim * n_total * 2            # folded weights
                      + B * HW * dim * 4)            # out (f32)

    vmem_bytes = (2 * heads * tq * HW * 2            # attn double buffer
                  + 2 * HW * dim * 4                 # fmap double buffer
                  + 2 * dim * n_total * 2            # weight double buffer
                  + 2 * tq * dim * 4                 # out double buffer
                  + HW * n_total * 2)                # vW scratch
    vmem_limit = max(32 * 1024 * 1024, min(2 * vmem_bytes, 64 * 1024 * 1024))

    out_flat = pl.pallas_call(
        _make_aggregate_kernel(heads, dim, dim_head, use_project, tq),
        out_shape=jax.ShapeDtypeStruct((B, HW, dim), fmap.dtype),
        grid=(B, nq),
        in_specs=[
            pl.BlockSpec((pl.Squeezed(), heads, tq, HW), lambda b, q: (b, 0, q, 0)),
            pl.BlockSpec((pl.Squeezed(), HW, dim), lambda b, q: (b, 0, 0)),
            pl.BlockSpec((dim, n_total), lambda b, q: (0, 0)),
        ],
        out_specs=pl.BlockSpec((pl.Squeezed(), tq, dim), lambda b, q: (b, q, 0)),
        scratch_shapes=[pltpu.VMEM((HW, n_total), jnp.bfloat16)],
        compiler_params=pltpu.CompilerParams(
            dimension_semantics=("parallel", "arbitrary"),
            vmem_limit_bytes=vmem_limit),
        cost_estimate=pl.CostEstimate(
            flops=flops, transcendentals=0, bytes_accessed=bytes_accessed),
    )(attn, fmap_flat, w_all)

    return jnp.transpose(out_flat.reshape(B, H, W, dim), (0, 3, 1, 2))  # NCHW


# ----------------------------------------------------------------------------
# Deterministic parameter init (1x1 convs stored as (in, out) matrices).
# ----------------------------------------------------------------------------
def make_params(key, dim, heads, dim_head):
    inner_dim = heads * dim_head
    k_wv, k_wp = jax.random.split(key, 2)
    params = dict(
        wv=jax.random.normal(k_wv, (dim, inner_dim), jnp.float32) * 0.05,
        # gamma is torch.zeros(1) at init; use a nonzero value so the
        # aggregation path is actually exercised by the correctness check.
        gamma=jnp.asarray([0.5], jnp.float32),
    )
    if dim != inner_dim:
        params["wp"] = jax.random.normal(
            k_wp, (inner_dim, dim), jnp.float32) * 0.05
    return params


# ----------------------------------------------------------------------------
# Pure-JAX f32 reference mirroring the PyTorch forward (NCHW) for validation.
# ----------------------------------------------------------------------------
def aggregate_ref(attn, fmap, params, *, heads):
    B, dim, H, W = fmap.shape
    wv = params["wv"]
    inner_dim = wv.shape[1]
    dim_head = inner_dim // heads
    hi = jax.lax.Precision.HIGHEST
    attn = attn.astype(jnp.float32)

    v = jnp.einsum('io,bixy->boxy', wv, fmap, precision=hi)         # to_v (1x1)
    v = v.reshape(B, heads, dim_head, H * W).transpose(0, 1, 3, 2)  # b h (xy) d
    out = jnp.einsum('bhij,bhjd->bhid', attn, v, precision=hi)
    out = out.transpose(0, 1, 3, 2).reshape(B, inner_dim, H, W)     # b (h d) x y
    if "wp" in params:
        out = jnp.einsum('io,bixy->boxy', params["wp"], out, precision=hi)
    return fmap + params["gamma"][0] * out


if __name__ == "__main__":
    configs = [
        # project path: dim != heads * dim_head
        dict(B=2, dim=128, heads=2, dim_head=128, H=16, W=16),
        # no-project path: dim == heads * dim_head
        dict(B=2, dim=256, heads=2, dim_head=128, H=16, W=16),
    ]
    key = jax.random.PRNGKey(0)
    for cfg in configs:
        B, dim, heads, dim_head, H, W = (cfg[k] for k in
                                         ("B", "dim", "heads", "dim_head", "H", "W"))
        HW = H * W
        key, k_attn, k_fmap, k_p = jax.random.split(key, 4)
        fmap = jax.random.normal(k_fmap, (B, dim, H, W), jnp.float32)
        # Row-stochastic attention from the upstream softmax, emitted in bf16.
        attn = jax.nn.softmax(
            jax.random.normal(k_attn, (B, heads, HW, HW), jnp.float32),
            axis=-1).astype(jnp.bfloat16)
        params = make_params(k_p, dim, heads, dim_head)

        out = jax.block_until_ready(
            aggregate_pallas(attn, fmap, params, heads=heads))
        ref = jax.block_until_ready(
            aggregate_ref(attn, fmap, params, heads=heads))

        assert out.shape == fmap.shape and out.dtype == fmap.dtype
        if not jnp.allclose(out, ref, atol=1e-2, rtol=1e-2):
            max_err = float(jnp.max(jnp.abs(out - ref)))
            raise AssertionError(
                f"Aggregate kernel mismatch (cfg={cfg}), max abs err = {max_err}")

    print("KERNEL_OK")
</pallas_src>

<mosaic_0001>
module attributes {stable_mosaic.version = 11 : i64} {
  func.func @body(%arg0: i32, %arg1: i32, %arg2: memref<1x2x128x256xbf16, #tpu.memory_space<vmem>>, %arg3: memref<1x256x128xf32, #tpu.memory_space<vmem>>, %arg4: memref<128x256xbf16, #tpu.memory_space<vmem>>, %arg5: memref<1x128x128xf32, #tpu.memory_space<vmem>>, %arg6: memref<256x256xbf16, #tpu.memory_space<vmem>>) attributes {dimension_semantics = [#tpu.dimension_semantics<parallel>, #tpu.dimension_semantics<arbitrary>], iteration_bounds = array<i64: 2, 2>, scalar_prefetch = 0 : i64, scratch_operands = 1 : i64, tpu.core_type = #tpu.core_type<tc>, window_params = [{transform_indices = @transform_0, window_bounds = array<i64: 1, 2, 128, 256>}, {transform_indices = @transform_1, window_bounds = array<i64: 1, 256, 128>}, {pipeline_mode = #tpu.pipeline_mode<synchronous>, transform_indices = @transform_2, window_bounds = array<i64: 128, 256>}, {transform_indices = @transform_3, window_bounds = array<i64: 1, 128, 128>}]} {
    %c0_i32 = arith.constant 0 : i32
    %0 = arith.cmpi eq, %arg1, %c0_i32 : i32
    %1 = arith.extui %0 : i1 to i32
    %c0_i32_0 = arith.constant 0 : i32
    %2 = arith.cmpi ne, %1, %c0_i32_0 : i32
    scf.if %2 {
      %c0_16 = arith.constant 0 : index
      %c0_17 = arith.constant 0 : index
      %c0_18 = arith.constant 0 : index
      %21 = vector.load %arg3[%c0_16, %c0_17, %c0_18] : memref<1x256x128xf32, #tpu.memory_space<vmem>>, vector<1x256x128xf32>
      %22 = vector.shape_cast %21 : vector<1x256x128xf32> to vector<256x128xf32>
      %23 = arith.truncf %22 : vector<256x128xf32> to vector<256x128xbf16>
      %c0_19 = arith.constant 0 : index
      %c0_20 = arith.constant 0 : index
      %24 = vector.load %arg4[%c0_19, %c0_20] : memref<128x256xbf16, #tpu.memory_space<vmem>>, vector<128x256xbf16>
      %cst_21 = arith.constant dense<0.000000e+00> : vector<256x256xf32>
      %25 = tpu.matmul %23, %24, %cst_21 {dimension_numbers = #tpu.dot_dimension_numbers<[1], [0], [0], [1], [0, 0, 1, 1], [], []>} : vector<256x128xbf16>, vector<128x256xbf16>, vector<256x256xf32> -> vector<256x256xf32>
      %26 = arith.truncf %25 : vector<256x256xf32> to vector<256x256xbf16>
      %c0_22 = arith.constant 0 : index
      %c0_23 = arith.constant 0 : index
      %27 = vector.load %arg6[%c0_22, %c0_23] : memref<256x256xbf16, #tpu.memory_space<vmem>>, vector<256x256xbf16>
      tpu.vector_store %arg6[%c0_22, %c0_23], %26 {strides = array<i32>} : memref<256x256xbf16, #tpu.memory_space<vmem>>, vector<256x256xbf16>,
    } else {
    }
    %c128_i32 = arith.constant 128 : i32
    %3 = arith.muli %arg1, %c128_i32 : i32
    %4 = tpu.assume_multiple %3, 128 : i32
    %c0 = arith.constant 0 : index
    %5 = arith.index_cast %4 : i32 to index
    %c0_1 = arith.constant 0 : index
    %6 = vector.load %arg3[%c0, %5, %c0_1] : memref<1x256x128xf32, #tpu.memory_space<vmem>>, vector<1x128x128xf32>
    %7 = vector.shape_cast %6 : vector<1x128x128xf32> to vector<128x128xf32>
    %c0_2 = arith.constant 0 : index
    %c0_3 = arith.constant 0 : index
    %c0_4 = arith.constant 0 : index
    %c0_5 = arith.constant 0 : index
    %8 = vector.load %arg2[%c0_2, %c0_3, %c0_4, %c0_5] : memref<1x2x128x256xbf16, #tpu.memory_space<vmem>>, vector<1x1x128x256xbf16>
    %9 = vector.shape_cast %8 : vector<1x1x128x256xbf16> to vector<128x256xbf16>
    %c0_6 = arith.constant 0 : index
    %c0_7 = arith.constant 0 : index
    %10 = vector.load %arg6[%c0_6, %c0_7] : memref<256x256xbf16, #tpu.memory_space<vmem>>, vector<256x128xbf16>
    %cst = arith.constant dense<0.000000e+00> : vector<128x128xf32>
    %11 = tpu.matmul %9, %10, %cst {dimension_numbers = #tpu.dot_dimension_numbers<[1], [0], [0], [1], [0, 0, 1, 1], [], []>} : vector<128x256xbf16>, vector<256x128xbf16>, vector<128x128xf32> -> vector<128x128xf32>
    %12 = arith.addf %7, %11 : vector<128x128xf32>
    %c0_8 = arith.constant 0 : index
    %c1 = arith.constant 1 : index
    %c0_9 = arith.constant 0 : index
    %c0_10 = arith.constant 0 : index
    %13 = vector.load %arg2[%c0_8, %c1, %c0_9, %c0_10] : memref<1x2x128x256xbf16, #tpu.memory_space<vmem>>, vector<1x1x128x256xbf16>
    %14 = vector.shape_cast %13 : vector<1x1x128x256xbf16> to vector<128x256xbf16>
    %c0_11 = arith.constant 0 : index
    %c128 = arith.constant 128 : index
    %15 = vector.load %arg6[%c0_11, %c128] : memref<256x256xbf16, #tpu.memory_space<vmem>>, vector<256x128xbf16>
    %cst_12 = arith.constant dense<0.000000e+00> : vector<128x128xf32>
    %16 = tpu.matmul %14, %15, %cst_12 {dimension_numbers = #tpu.dot_dimension_numbers<[1], [0], [0], [1], [0, 0, 1, 1], [], []>} : vector<128x256xbf16>, vector<256x128xbf16>, vector<128x128xf32> -> vector<128x128xf32>
    %17 = arith.addf %12, %16 : vector<128x128xf32>
    %c0_13 = arith.constant 0 : index
    %c0_14 = arith.constant 0 : index
    %c0_15 = arith.constant 0 : index
    %18 = vector.load %arg5[%c0_13, %c0_14, %c0_15] : memref<1x128x128xf32, #tpu.memory_space<vmem>>, vector<1x128x128xf32>
    %19 = vector.shape_cast %18 : vector<1x128x128xf32> to vector<128x128xf32>
    %20 = vector.shape_cast %17 : vector<128x128xf32> to vector<1x128x128xf32>
    tpu.vector_store %arg5[%c0_13, %c0_14, %c0_15], %20 {strides = array<i32>} : memref<1x128x128xf32, #tpu.memory_space<vmem>>, vector<1x128x128xf32>,
    return
  }
  func.func @transform_0(%arg0: i32, %arg1: i32) -> (i32, i32, i32, i32) {
    %c0_i32 = arith.constant 0 : i32
    %c0_i32_0 = arith.constant 0 : i32
    %c0_i32_1 = arith.constant 0 : i32
    return %arg0, %c0_i32, %arg1, %c0_i32_0 : i32, i32, i32, i32
  }
  func.func @transform_1(%arg0: i32, %arg1: i32) -> (i32, i32, i32) {
    %c0_i32 = arith.constant 0 : i32
    %c0_i32_0 = arith.constant 0 : i32
    %c0_i32_1 = arith.constant 0 : i32
    return %arg0, %c0_i32, %c0_i32_0 : i32, i32, i32
  }
  func.func @transform_2(%arg0: i32, %arg1: i32) -> (i32, i32) {
    %c0_i32 = arith.constant 0 : i32
    %c0_i32_0 = arith.constant 0 : i32
    %c0_i32_1 = arith.constant 0 : i32
    return %c0_i32, %c0_i32_0 : i32, i32
  }
  func.func @transform_3(%arg0: i32, %arg1: i32) -> (i32, i32, i32) {
    %c0_i32 = arith.constant 0 : i32
    %c0_i32_0 = arith.constant 0 : i32
    return %arg0, %arg1, %c0_i32 : i32, i32, i32
  }
}

</mosaic_0001>

<bundles_post_ra>
// kernel: tpu_custom_call.1
= control target key start
LH: loop header
LB: loop body
LE: loop exit
PB: predicated region body
PF: predicated region fallthrough
CT: control target
= control target key end

     0   :  { %s2420_s0 = inlined_call_operand.hbm [shape: bf16[2,2,256,256], index: 0, kind: input, shape index: {}]   ;;  %s2421_s1 = inlined_call_operand.hbm [shape: f32[2,256,128], index: 1, kind: input, shape index: {}]   ;;  %s2422_s2 = inlined_call_operand.hbm [shape: bf16[128,256], index: 2, kind: input, shape index: {}]   ;;  %s2423_s3 = inlined_call_operand.hbm [shape: f32[2,256,128], index: 3, kind: output, shape index: {}]  }
   0x1   :  { %2441 = sst [smem:[#allocation26_spill]] %s2422_s2 }
   0x2   :  { %2442 = sst [smem:[#allocation27_spill]] %s2423_s3 }
   0x3   :  { %8 = vsyncpa [#allocation4], 0 }
   0x4   :  { %10 = vsyncpa [#allocation4 + $0x1], 0 }
   0x5   :  { %11 = vsyncpa [#allocation7], 0 }
   0x6   :  { %13 = vsyncpa [#allocation7 + $0x1], 0 }
   0x7   :  { %14 = vsyncpa [#allocation5], 0 }
   0x8   :  { %16 = vsyncpa [#allocation5 + $0x1], 0  ;;  %s1984_s12 = smov 0   ;;  %s1986_s13 = smov 0  }
   0x9   :  { %s1988_s14 = smov 0   ;;  %s1990_s15 = smov 0  }
   0xa   :  { %s1992_s16 = smov 0   ;;  %s1994_s17 = smov 0  }
   0xb   :  { %s1996_s18 = smov 0   ;;  %s1998_s19 = smov 0  }
   0xc   :  { %s2000_s20 = smov 0   ;;  %s2002_s21 = smov 0  }
   0xd   :  { %s2004_s22 = smov 0  }
   0xe LB: > { %2443 = sst [smem:[#allocation17_spill]] %s1918_s15  ;;  %s2040_s23 = sadd.s32 4294967295, %s1946_s22   ;;  %s1946_s22 = sphi %s2004_s22, %s22_s22   ;;  %s1942_s21 = sphi %s2002_s21, %s2489_s21   ;;  %s1938_s20 = sphi %s2000_s20, %s2480_s20   ;;  %s1934_s19 = sphi %s1998_s19, %s2488_s19   ;;  %s1930_s18 = sphi %s1996_s18, %s2487_s18   ;;  %s1926_s17 = sphi %s1994_s17, %s2478_s17   ;;  %s1922_s16 = sphi %s1992_s16, %s2486_s16   ;;  %s1918_s15 = sphi %s1990_s15, %s2485_s15   ;;  %s1914_s14 = sphi %s1988_s14, %s2484_s14   ;;  %s1910_s13 = sphi %s1986_s13, %s2483_s13   ;;  %s1906_s12 = sphi %s1984_s12, %s2482_s12  }
   0xf   : > { %2444 = sst [smem:[#allocation18_spill]] %s1926_s17  ;;  %s1321_s24 = sadd.s32 4294967294, %s1946_s22  }
  0x10   : > { %2445 = sst [smem:[#allocation19_spill]] %s1938_s20  ;;  %s31_s25 = sadd.s32 1, %s1938_s20 }
  0x11   : > { %s34_s26 = sadd.s32 1, %s1942_s21  ;;  %p32_p0 = scmp.ge.s32.totalorder %s31_s25, 2 }
  0x12   : > { %s43_s27 = sadd.s32 1, %s1926_s17  ;;  %p50_p1 = scmp.ne.s32.totalorder %s1926_s17, %s1922_s16 }
  0x13   : > { %p51_p2 = scmp.eq.s32.totalorder %s1946_s22, 0  ;;  %s2491_s25 = smov (%p32_p0, %s31_s25), 0 }
  0x14   : > { %2446 = sst [smem:[#allocation20_spill]] %s2491_s25  ;;  %s2493_s26 = smov (!%p32_p0, %s34_s26), %s1942_s21 }
  0x15   : > { %s39_s28 = ssub.s32 %s1938_s20, %s2491_s25  ;;  %p2059_p3 = por %p51_p2, %p50_p1 }
  0x16   : > { %p36_p4 = scmp.ge.s32.totalorder %s2493_s26, 2  ;;  %p2424_p5 = scmp.ne.s32.totalorder %s1922_s16, %s1918_s15 }
  0x17   : > { %s2447_s29 = scalar_select %p2059_p3, 1, 0 }
  0x18   : > { %p2430_p6 = scmp.eq.s32.totalorder %s2040_s23, 0  ;;  %s69_s30 = sadd.s32 1, %s1914_s14 }
  0x19   : > { %s2495_s26 = smov (%p36_p4, %s2493_s26), 0  ;;  %p76_p8 = scmp.ne.s32.totalorder %s1914_s14, %s1910_s13 }
  0x1a   : > { %2448 = sst [smem:[#allocation21_spill]] %s2495_s26  ;;  %p2074_p7 = por %p2430_p6, %p2424_p5 }
  0x1b   : > { %s38_s5 = ssub.s32 %s1942_s21, %s2495_s26  ;;  %p82_p9 = scmp.ne.s32.totalorder %s1910_s13, %s1906_s12 }
  0x1c   : > { %s2449_s4 = scalar_select %p2074_p7, 1, 0 }
  0x1d   : > { %s40_s6 = sor.u32 %s39_s28, %s38_s5  ;;  %p67_p10 = scmp.eq.s32.totalorder %s38_s5, 0 }
  0x1e   : > { %p41_p11 = scmp.eq.s32.totalorder %s40_s6, 0  ;;  %p2086_p12 = por %p76_p8, %p51_p2 }
  0x1f   : > { %s2091_s8 = scalar_select %p67_p10, %s1914_s14, %s69_s30  }
  0x20   : > { %s2450_s7 = scalar_select %p2086_p12, 1, 0 }
  0x21   : > { %2451 = sst [smem:[#allocation22_spill]] %s2091_s8  ;;  %p2098_p13 = por %p82_p9, %p2430_p6 }
  0x22   : > { %s2094_s9 = scalar_select %p41_p11, %s1926_s17, %s43_s27  }
  0x23   : > { %s2453_s10 = scalar_select %p2098_p13, 1, 0 }
  0x24   : > { %2452 = sst [smem:[#allocation23_spill]] %s2094_s9  ;;  %p129_p0 = scmp.eq.s32.totalorder %s2040_s23, 3 }
  0x25   : > { %p135_p4 = scmp.eq.s32.totalorder %s1321_s24, 3  ;;  %p1322_p5 = scmp.ge.s32.totalorder %s1946_s22, 1 }
  0x26   : > { %p2107_p7 = por %p129_p0, %p50_p1  ;;  %p142_p2 = scmp.lt.s32.totalorder %s1946_s22, 5 }
  0x27   : > { %p2456_p8 = scmp.ne.s32.totalorder %s1922_s16, %s1918_s15  ;;  %s1948_s28 = smov [#allocation8]  }
  0x28   : > { %s2454_s11 = scalar_select %p2107_p7, 1, 0 }
  0x29   : > { %p2115_p12 = por %p135_p4, %p2456_p8  ;;  %p2119_p10 = pnand %p1322_p5, %p142_p2 }
  0x2a   : > { %2455 = sst [smem:[#allocation24_spill]] %s2454_s11  ;;  %s154_s30 = sshll.u32 %s1948_s28, 4  ;;  %s155_s30 = int_to_ptr.vmem [resolvable:$true] %s154_s30 }
  0x2b   : > { %s2457_s12 = scalar_select %p2115_p12, 1, 0 }
  0x2c   : > { %s2459_s27 = scalar_select %p2119_p10, 1, 0 }
  0x2d   : > { %2458 = sst [smem:[#allocation25_spill]] %s2457_s12  ;;  %p1575_p9 = pneg %p2119_p10 }
  0x2e   : > { %s2461_s2 = sld [smem:[#allocation26_spill]] }
  0x2f   : > { %p2127_p1 = pnand %p1575_p9, %p2430_p6 }
  0x31   : > { %p1762_p11 = pneg %p2127_p1 }
  0x34   : > { %s1760_s26 = scalar_lea.hbm %s2461_s2, 2048 }
  0x35   : > { %p1761_p5 = scmp.ne.s32.totalorder %s2461_s2, %s1760_s26  ;;  %p1767_p2 = scmp.lt.u32.totalorder %s1760_s26, %s2461_s2 }
  0x37   : > { %p1763_p0 = pnand %p1762_p11, %p1761_p5 }
  0x39   : > { %p1764_p4 = pneg %p1763_p0 }
  0x3b   : > { %p1769_p8 = pnand %p1767_p2, %p1764_p4 }
  0x3d   : > { %1772 = shalt.err (!%p1769_p8)
}
  0x3e   : > { %s1773_s12 = scalar_lea.vmem %s155_s30, 2048  ;;  %p1781_p7 = scmp.lt.s32.totalorder %s155_s30, %s155_s30 }
  0x3f   : > { %p1774_p9 = scmp.ne.s32.totalorder %s155_s30, %s1773_s12  ;;  %p1782_p13 = scmp.lt.s32.totalorder %s1773_s12, %s1773_s12 }
  0x41   : > { %p1776_p6 = pnand %p1774_p9, %p1762_p11  ;;  %p1783_p10 = por %p1782_p13, %p1781_p7 }
  0x43   : > { %p1777_p12 = pneg %p1776_p6 }
  0x45   : > { %p1784_p3 = pnand %p1783_p10, %p1777_p12 }
  0x47   : > { %1787 = shalt.err (!%p1784_p3)
}
  0x48   : > { %s1949_s25 = smov 128   ;;  %s1950_s9 = smov 8  }
  0x49   : > { %1578 = dma.hbm_to_vmem [thread:$0]  (!%p2127_p1), %s2461_s2, 2048, %s155_s30, [#allocation7], %s1949_s25, %s1949_s25, %s1950_s9  }
  0x4a   : > { %p1324_p5 = scmp.ge.s32.totalorder %s1946_s22, 4 }
  0x4c   : > { %164 = sbr.rel (%p1324_p5) target bundleno = 125 (0x7d), region = 20 }
  0x53   : > { %s168_s26 = sand.u32 1, %s1926_s17   ;;  %s1412_s8 = sshll.u32 %s1938_s20, 5 }
  0x54   : > { %s1325_s12 = sshll.u32 %s168_s26, 8  ;;  %s1328_s28 = sshll.u32 %s1942_s21, 7 }
  0x55   : > { %s179_s24 = sadd.s32 %s1412_s8, %s1328_s28  ;;  %s172_s15 = scalar_lea.vmem [#allocation3], %s1325_s12 }
  0x56   : > { %s194_s5 = sshll.u32 %s172_s15, 4  ;;  %s1329_s30 = sshll.u32 %s179_s24, 6  ;;  %s195_s5 = int_to_ptr.vmem [resolvable:$true] %s194_s5 }
  0x57   : > { %p2462_p3 = scmp.ne.s32.totalorder %s2447_s29, 0  ;;  %s1951_s9 = smov 4096  }
  0x58   : > { %s1952_s2 = smov 2048   ;;  %s1953_s20 = smov 16  }
  0x59   : > { %s1560_s25 = scalar_select %p2462_p3, [#allocation0], [#allocation12] }
  0x5a   : > { %1561 = sst [smem:[#allocation11]] (%p2462_p3), %s1951_s9  ;;  %s1954_s8 = smov 128  }
  0x5b   : > { %s186_s6 = sld [smem:[%s1560_s25]]   ;;  %s181_s28 = scalar_lea.hbm %s2420_s0, %s1329_s30 }
  0x5c   : > { %1562 = sst [smem:[#allocation11 + $0x1]] (%p2462_p3), %s1952_s2  ;;  %s1955_s24 = smov 8  }
  0x5d   : > { %1563 = sst [smem:[#allocation11 + $0x2]] (%p2462_p3), %s1953_s20  ;;  %s169_s17 = scalar_lea.sflag [#allocation4], %s168_s26 }
  0x5e   : > { %1564 = sst [smem:[#allocation11 + $0x3]] (%p2462_p3), %s1954_s8  ;;  %s1956_s2 = smov [#allocation10]  }
  0x5f   : > { %1565 = sst [smem:[#allocation11 + $0x4]] (%p2462_p3), %s1954_s8  ;;  %s217_s20 = sand.u32 1, %s1946_s22  }
  0x60   : > { %1566 = sst [smem:[#allocation11 + $0x5]] (%p2462_p3), %s1955_s24  ;;  %s219_s3 = sand.u32 1, %s1914_s14  }
  0x61   : > { %s1330_s25 = sshll.u32 %s186_s6, 26  ;;  %s1332_s11 = sshll.u32 %s219_s3, 8 }
  0x62   : > { %s1331_s9 = sadd.s32 134217728, %s1330_s25  ;;  %s1413_s15 = sshll.u32 %s1942_s21, 12 }
  0x63   : > { %1567 = dma.general (%p2462_p3), %s181_s28, 4096, %s195_s5, %s169_s17, %s1956_s2, [#allocation11], %s1331_s9, 0  }
  0x64   : > { %s2176_s8 = scalar_lea.hbm %s2421_s1, %s1413_s15  ;;  %s221_s26 = scalar_lea.vmem [#allocation6], %s1332_s11 }
  0x65   : > { %s228_s29 = sshll.u32 %s221_s26, 4  ;;  %s2180_s17 = scalar_lea.sflag [#allocation7], %s217_s20  ;;  %s2178_s29 = int_to_ptr.vmem [resolvable:$true] %s228_s29 }
  0x66   : > { %s1788_s5 = scalar_lea.hbm %s2176_s8, 4096  ;;  %p2463_p7 = scmp.ne.s32.totalorder %s2450_s7, 0 }
  0x67   : > { %p1789_p6 = scmp.ne.s32.totalorder %s2176_s8, %s1788_s5  ;;  %s1792_s28 = scalar_lea.hbm %s2421_s1, 8192 }
  0x68   : > { %p1793_p10 = scmp.lt.u32.totalorder %s2176_s8, %s2421_s1  ;;  %p1794_p1 = scmp.lt.u32.totalorder %s1792_s28, %s1788_s5 }
  0x69   : > { %p1790_p12 = pnand %p1789_p6, %p2463_p7  ;;  %p1796_p0 = scmp.lt.u32.totalorder %s1788_s5, %s2176_s8 }
  0x6a   : > { %p1795_p11 = por %p1794_p1, %p1793_p10 }
  0x6b   : > { %p1791_p13 = pneg %p1790_p12 }
  0x6c   : > { %p1797_p4 = por %p1796_p0, %p1795_p11 }
  0x6e   : > { %p1798_p2 = pnand %p1797_p4, %p1791_p13 }
  0x70   : > { %1801 = shalt.err (!%p1798_p2)
}
  0x71   : > { %s1802_s11 = scalar_lea.vmem %s2178_s29, 4096  ;;  %s1957_s9 = smov [#allocation6]  }
  0x72   : > { %p1803_p8 = scmp.ne.s32.totalorder %s2178_s29, %s1802_s11  ;;  %s1806_s2 = sshll.u32 %s1957_s9, 4  ;;  %s1807_s2 = int_to_ptr.vmem [resolvable:$false] %s1806_s2 }
  0x73   : > { %s1808_s20 = scalar_lea.vmem %s1807_s2, 8192  ;;  %p1809_p3 = scmp.lt.s32.totalorder %s2178_s29, %s1807_s2 }
  0x74   : > { %p1804_p9 = pnand %p1803_p8, %p2463_p7  ;;  %p1810_p6 = scmp.lt.s32.totalorder %s1808_s20, %s1802_s11 }
  0x76   : > { %p1805_p5 = pneg %p1804_p9  ;;  %p1811_p12 = por %p1810_p6, %p1809_p3 }
  0x78   : > { %p1812_p10 = pnand %p1811_p12, %p1805_p5 }
  0x7a   : > { %1815 = shalt.err (!%p1812_p10)
}
  0x7b   : > { %s1958_s15 = smov 128   ;;  %s1959_s30 = smov 8  }
  0x7c   : > { %1568 = dma.hbm_to_vmem [thread:$0]  (%p2463_p7), %s2176_s8, 4096, %s2178_s29, %s2180_s17, %s1958_s15, %s1958_s15, %s1959_s30  }
  0x7d PF: > { %p2464_p13 = scmp.ne.s32.totalorder %s2459_s27, 0 }
  0x7e   : > { %s2207_s12 = sand.u32 (!%p2464_p13), 1, %s1922_s16   ;;  %p2465_p1 = scmp.ne.s32.totalorder (!%p2464_p13), %s2449_s4, 0 }
  0x7f   : > { %240 = sbr.rel (%p2464_p13) target bundleno = 777 (0x309), region = 32  ;;  %s1336_s26 = sshll.u32 (!%p2464_p13), %s2207_s12, 8 }
  0x80   : > { %s243_s5 = scalar_lea.sflag (!%p2464_p13), [#allocation4], %s2207_s12  ;;  %s2211_s3 = scalar_lea.vmem (!%p2464_p13), [#allocation3], %s1336_s26 }
  0x86   : > { %1889 = dma.done.wait (%p2465_p1), %s243_s5, 4096  }
  0x87   : > { %1891 = vsyncadd (%p2465_p1), %s243_s5, 4294963200  ;;  %s251_s7 = sand.u32 1, %s2040_s23   ;;  %s253_s27 = sand.u32 1, %s1910_s13  }
  0x88   : > { %s1337_s8 = sshll.u32 %s253_s27, 8  ;;  %s252_s29 = scalar_lea.sflag [#allocation7], %s251_s7 }
  0x89   : > { %s2219_s17 = scalar_lea.vmem [#allocation6], %s1337_s8  ;;  %p2466_p7 = scmp.ne.s32.totalorder %s2453_s10, 0 }
  0x8b   : > { %1893 = dma.done.wait (%p2466_p7), %s252_s29, 4096  }
  0x8c   : > { %1895 = vsyncadd (%p2466_p7), %s252_s29, 4294963200  ;;  %p2467_p11 = scmp.eq.s32.totalorder %s2040_s23, 0 }
  0x8e   : > { %1897 = dma.done.wait (%p2467_p11), [#allocation7], 2048   ;;  %p2468_p0 = pmov %p2467_p11 }
  0x8f   : > { %s1339_s4 = sshll.u32 %s2207_s12, 7  ;;  %p1340_p4 = scmp.ne.s32.totalorder %s1930_s18, 0 }
  0x90   : > { %1899 = vsyncadd (%p2468_p0), [#allocation7], 4294965248  ;;  %s2230_s6 = scalar_lea.vmem [#allocation9], %s1339_s4  ;;  %v1688_v0 = vld [vmem:[#allocation8 + $0x4] ss:$8 sps:$4 sm:$0xff] (!%p1340_p4)   ;;  %v1960_v2 = vmov (!%p1340_p4), 0  }
  0x91   : > { %293 = sbr.rel (%p1340_p4) target bundleno = 452 (0x1c4), region = 48  ;;  %v1690_v1 = vld [vmem:[#allocation8] ss:$8 sps:$4 sm:$0xff] (!%p1340_p4)   ;;  %470 = vmatprep.mubr.bf16.mxu0 (!%p1340_p4), %v1960_v2  ;;  %550 = vmatprep.mubr.bf16.mxu1 (!%p1340_p4), %v1960_v2  ;;  %v1691_v3 = vld [vmem:[#allocation8 + $0x14] ss:$8 sps:$4 sm:$0xff] (!%p1340_p4)  }
  0x92   : > { %438 = vmatprep.subr.bf16.mxu0 (!%p1340_p4), %v1688_v0  ;;  %1542 = vmatprep.subr.bf16.mxu1 (!%p1340_p4), %v1688_v0  ;;  %v1693_v4 = vld [vmem:[#allocation8 + $0x10] ss:$8 sps:$4 sm:$0xff] (!%p1340_p4)   ;;  %v1694_v5 = vld [vmem:[#allocation8 + $0x24] ss:$8 sps:$4 sm:$0xff] (!%p1340_p4)   ;;  %v1696_v6 = vld [vmem:[#allocation8 + $0x20] ss:$8 sps:$4 sm:$0xff] (!%p1340_p4)  }
  0x93   : > { %439 = vmatpush1.bf16.msra.mxu0 (!%p1340_p4), %v1690_v1  ;;  %1550 = vmatpush1.bf16.msra.mxu1 (!%p1340_p4), %v1690_v1  ;;  %v1697_v7 = vld [vmem:[#allocation8 + $0x34] ss:$8 sps:$4 sm:$0xff] (!%p1340_p4)   ;;  %v1699_v8 = vld [vmem:[#allocation8 + $0x30] ss:$8 sps:$4 sm:$0xff] (!%p1340_p4)   ;;  %v1700_v9 = vld [vmem:[#allocation8 + $0x44] ss:$8 sps:$4 sm:$0xff] (!%p1340_p4)  }
  0x94   : > { %440 = vmatprep.subr.bf16.mxu0 (!%p1340_p4), %v1691_v3  ;;  %1543 = vmatprep.subr.bf16.mxu1 (!%p1340_p4), %v1691_v3  ;;  %v1702_v10 = vld [vmem:[#allocation8 + $0x40] ss:$8 sps:$4 sm:$0xff] (!%p1340_p4)   ;;  %v1703_v11 = vld [vmem:[#allocation8 + $0x54] ss:$8 sps:$4 sm:$0xff] (!%p1340_p4)   ;;  %v1705_v12 = vld [vmem:[#allocation8 + $0x50] ss:$8 sps:$4 sm:$0xff] (!%p1340_p4)  }
  0x95   : > { %v1706_v13 = vld [vmem:[#allocation8 + $0x64] ss:$8 sps:$4 sm:$0xff] (!%p1340_p4)   ;;  %v1708_v14 = vld [vmem:[#allocation8 + $0x60] ss:$8 sps:$4 sm:$0xff] (!%p1340_p4)   ;;  %v1709_v15 = vld [vmem:[#allocation8 + $0x74] ss:$8 sps:$4 sm:$0xff] (!%p1340_p4)  }
  0x96   : > { %v1711_v16 = vld [vmem:[#allocation8 + $0x70] ss:$8 sps:$4 sm:$0xff] (!%p1340_p4)   ;;  %v294_v17 = vld [vmem:[%s2219_s17] sm:$0xff] (!%p1340_p4)  ;;  %v295_v18 = vld [vmem:[%s2219_s17 + $0x8] sm:$0xff] (!%p1340_p4) }
  0x97   : > { %441 = vmatpush1.bf16.msra.mxu0 (!%p1340_p4), %v1693_v4  ;;  %1551 = vmatpush1.bf16.msra.mxu1 (!%p1340_p4), %v1693_v4  ;;  %v310_v19 = vld [vmem:[%s2219_s17 + $0x80] sm:$0xff] (!%p1340_p4)  ;;  %v311_v20 = vld [vmem:[%s2219_s17 + $0x88] sm:$0xff] (!%p1340_p4)  ;;  %v326_v21 = vpack.c.bf16 (!%p1340_p4), %v295_v18, %v294_v17  ;;  %v296_v23 = vld [vmem:[%s2219_s17 + $0x10] sm:$0xff] (!%p1340_p4) }
  0x98   : > { %442 = vmatprep.subr.bf16.mxu0 %v1694_v5  ;;  %1544 = vmatprep.subr.bf16.mxu1 %v1694_v5  ;;  %v334_v22 = vpack.c.bf16 %v311_v20, %v310_v19  ;;  %v297_v24 = vld [vmem:[%s2219_s17 + $0x18] sm:$0xff]  ;;  %v312_v25 = vld [vmem:[%s2219_s17 + $0x90] sm:$0xff]  ;;  %v298_v29 = vld [vmem:[%s2219_s17 + $0x20] sm:$0xff] }
  0x99   : > { %v313_v26 = vld [vmem:[%s2219_s17 + $0x98] sm:$0xff]  ;;  %v327_v27 = vpack.c.bf16 %v297_v24, %v296_v23  ;;  %v299_v30 = vld [vmem:[%s2219_s17 + $0x28] sm:$0xff]  ;;  %v314_v31 = vld [vmem:[%s2219_s17 + $0xa0] sm:$0xff] }
  0x9a   : > { %v335_v28 = vpack.c.bf16 %v313_v26, %v312_v25  ;;  %v315_v32 = vld [vmem:[%s2219_s17 + $0xa8] sm:$0xff]  ;;  %v328_v33 = vpack.c.bf16 %v299_v30, %v298_v29  ;;  %v300_v35 = vld [vmem:[%s2219_s17 + $0x30] sm:$0xff]  ;;  %v301_v36 = vld [vmem:[%s2219_s17 + $0x38] sm:$0xff] }
  0x9b   : > { %443 = vmatpush1.bf16.msra.mxu0 %v1696_v6  ;;  %1552 = vmatpush1.bf16.msra.mxu1 %v1696_v6  ;;  %v336_v34 = vpack.c.bf16 %v315_v32, %v314_v31  ;;  %v316_v37 = vld [vmem:[%s2219_s17 + $0xb0] sm:$0xff]  ;;  %v317_v38 = vld [vmem:[%s2219_s17 + $0xb8] sm:$0xff]  ;;  %v329_v39 = vpack.c.bf16 %v301_v36, %v300_v35  ;;  %v302_v41 = vld [vmem:[%s2219_s17 + $0x40] sm:$0xff] }
  0x9c   : > { %444 = vmatprep.subr.bf16.mxu0 %v1697_v7  ;;  %1545 = vmatprep.subr.bf16.mxu1 %v1697_v7  ;;  %v337_v40 = vpack.c.bf16 %v317_v38, %v316_v37  ;;  %v303_v42 = vld [vmem:[%s2219_s17 + $0x48] sm:$0xff]  ;;  %v318_v43 = vld [vmem:[%s2219_s17 + $0xc0] sm:$0xff]  ;;  %v304_v47 = vld [vmem:[%s2219_s17 + $0x50] sm:$0xff] }
  0x9d   : > { %v319_v44 = vld [vmem:[%s2219_s17 + $0xc8] sm:$0xff]  ;;  %v330_v45 = vpack.c.bf16 %v303_v42, %v302_v41  ;;  %v305_v48 = vld [vmem:[%s2219_s17 + $0x58] sm:$0xff]  ;;  %v320_v49 = vld [vmem:[%s2219_s17 + $0xd0] sm:$0xff] }
  0x9e   : > { %v338_v46 = vpack.c.bf16 %v319_v44, %v318_v43  ;;  %v321_v50 = vld [vmem:[%s2219_s17 + $0xd8] sm:$0xff]  ;;  %v331_v51 = vpack.c.bf16 %v305_v48, %v304_v47  ;;  %v306_v53 = vld [vmem:[%s2219_s17 + $0x60] sm:$0xff]  ;;  %v307_v54 = vld [vmem:[%s2219_s17 + $0x68] sm:$0xff] }
  0x9f   : > { %445 = vmatpush1.bf16.msra.mxu0 %v1699_v8  ;;  %1553 = vmatpush1.bf16.msra.mxu1 %v1699_v8  ;;  %v339_v52 = vpack.c.bf16 %v321_v50, %v320_v49  ;;  %v322_v55 = vld [vmem:[%s2219_s17 + $0xe0] sm:$0xff]  ;;  %v323_v56 = vld [vmem:[%s2219_s17 + $0xe8] sm:$0xff]  ;;  %v332_v57 = vpack.c.bf16 %v307_v54, %v306_v53  ;;  %v308_v59 = vld [vmem:[%s2219_s17 + $0x70] sm:$0xff] }
  0xa0   : > { %446 = vmatprep.subr.bf16.mxu0 %v1700_v9  ;;  %1546 = vmatprep.subr.bf16.mxu1 %v1700_v9  ;;  %v340_v58 = vpack.c.bf16 %v323_v56, %v322_v55  ;;  %v309_v60 = vld [vmem:[%s2219_s17 + $0x78] sm:$0xff]  ;;  %v324_v61 = vld [vmem:[%s2219_s17 + $0xf0] sm:$0xff] }
  0xa1   : > { %v325_v62 = vld [vmem:[%s2219_s17 + $0xf8] sm:$0xff]  ;;  %v333_v63 = vpack.c.bf16 %v309_v60, %v308_v59 }
  0xa2   : > { %v341_v0 = vpack.c.bf16 %v325_v62, %v324_v61 }
  0xa3   : > { %447 = vmatpush1.bf16.msra.mxu0 %v1702_v10  ;;  %1554 = vmatpush1.bf16.msra.mxu1 %v1702_v10 }
  0xa4   : > { %448 = vmatprep.subr.bf16.mxu0 %v1703_v11  ;;  %1547 = vmatprep.subr.bf16.mxu1 %v1703_v11 }
  0xa7   : > { %449 = vmatpush1.bf16.msra.mxu0 %v1705_v12  ;;  %1555 = vmatpush1.bf16.msra.mxu1 %v1705_v12 }
  0xa8   : > { %450 = vmatprep.subr.bf16.mxu0 %v1706_v13  ;;  %1548 = vmatprep.subr.bf16.mxu1 %v1706_v13 }
  0xab   : > { %451 = vmatpush1.bf16.msra.mxu0 %v1708_v14  ;;  %1556 = vmatpush1.bf16.msra.mxu1 %v1708_v14 }
  0xac   : > { %452 = vmatprep.subr.bf16.mxu0 %v1709_v15  ;;  %1549 = vmatprep.subr.bf16.mxu1 %v1709_v15 }
  0xaf   : > { %453 = vmatpush1.bf16.msra.mxu0 %v1711_v16  ;;  %1557 = vmatpush1.bf16.msra.mxu1 %v1711_v16 }
  0xb2   : > { %471 = vmatmul.mubr.bf16.vlgmr.msra.gmra.mrb[0].mxu0 %v326_v21  ;;  %551 = vmatmul.mubr.bf16.vlgmr.msra.gmra.mrb[0].mxu1 %v334_v22 }
  0xb3   : > { %480 = vmatprep.mubr.bf16.mxu0 %v1960_v2  ;;  %560 = vmatprep.mubr.bf16.mxu1 %v1960_v2 }
  0xba   : > { %481 = vmatmul.mubr.bf16.gmra.mrb[4].mxu0 %v327_v27  ;;  %561 = vmatmul.mubr.bf16.gmra.mrb[4].mxu1 %v335_v28 }
  0xbb   : > { %490 = vmatprep.mubr.bf16.mxu0 %v1960_v2  ;;  %570 = vmatprep.mubr.bf16.mxu1 %v1960_v2 }
  0xc2   : > { %491 = vmatmul.mubr.bf16.gmra.mrb[8].mxu0 %v328_v33  ;;  %571 = vmatmul.mubr.bf16.gmra.mrb[8].mxu1 %v336_v34 }
  0xc3   : > { %500 = vmatprep.mubr.bf16.mxu0 %v1960_v2  ;;  %580 = vmatprep.mubr.bf16.mxu1 %v1960_v2 }
  0xca   : > { %501 = vmatmul.mubr.bf16.gmra.mrb[12].mxu0 %v329_v39  ;;  %581 = vmatmul.mubr.bf16.gmra.mrb[12].mxu1 %v337_v40 }
  0xcb   : > { %510 = vmatprep.mubr.bf16.mxu0 %v1960_v2  ;;  %590 = vmatprep.mubr.bf16.mxu1 %v1960_v2 }
  0xd2   : > { %511 = vmatmul.mubr.bf16.gmra.mrb[16].mxu0 %v330_v45  ;;  %591 = vmatmul.mubr.bf16.gmra.mrb[16].mxu1 %v338_v46 }
  0xd3   : > { %520 = vmatprep.mubr.bf16.mxu0 %v1960_v2  ;;  %600 = vmatprep.mubr.bf16.mxu1 %v1960_v2 }
  0xda   : > { %521 = vmatmul.mubr.bf16.gmra.mrb[20].mxu0 %v331_v51  ;;  %601 = vmatmul.mubr.bf16.gmra.mrb[20].mxu1 %v339_v52 }
  0xdb   : > { %530 = vmatprep.mubr.bf16.mxu0 %v1960_v2  ;;  %610 = vmatprep.mubr.bf16.mxu1 %v1960_v2 }
  0xe2   : > { %531 = vmatmul.mubr.bf16.gmra.mrb[24].mxu0 %v332_v57  ;;  %611 = vmatmul.mubr.bf16.gmra.mrb[24].mxu1 %v340_v58 }
  0xe3   : > { %540 = vmatprep.mubr.bf16.mxu0 %v1960_v2  ;;  %620 = vmatprep.mubr.bf16.mxu1 %v1960_v2 }
  0xea   : > { %541 = vmatmul.mubr.bf16.gmra.mrb[28].mxu0 %v333_v63  ;;  %621 = vmatmul.mubr.bf16.gmra.mrb[28].mxu1 %v341_v0 }
 0x185   : > { %v472_v1 = vpop.f32.mrb[0].mxu0  ;;  %v552_v3 = vpop.f32.mrb[0].mxu1 }
 0x186   : > { %v474_v4 = vpop.f32.mrb[1].mxu0  ;;  %v554_v5 = vpop.f32.mrb[1].mxu1 }
 0x187   : > { %v476_v6 = vpop.f32.mrb[2].mxu0  ;;  %v556_v7 = vpop.f32.mrb[2].mxu1 }
 0x188   : > { %v631_v8 = vpack.c.bf16 %v476_v6, %v472_v1  ;;  %v647_v9 = vpack.c.bf16 %v556_v7, %v552_v3  ;;  %v478_v10 = vpop.f32.mrb[3].mxu0  ;;  %v558_v11 = vpop.f32.mrb[3].mxu1 }
 0x189   : > { %v632_v12 = vpack.c.bf16 %v478_v10, %v474_v4  ;;  %v648_v13 = vpack.c.bf16 %v558_v11, %v554_v5 }
 0x18a   : > { %663 = vst [vmem:[#allocation2] sm:$0xff] %v631_v8  ;;  %679 = vst [vmem:[#allocation2 + $0x80] sm:$0xff] %v647_v9 }
 0x18b   : > { %664 = vst [vmem:[#allocation2 + $0x8] sm:$0xff] %v632_v12  ;;  %680 = vst [vmem:[#allocation2 + $0x88] sm:$0xff] %v648_v13 }
 0x18d   : > { %v482_v2 = vpop.f32.mrb[4].mxu0  ;;  %v562_v14 = vpop.f32.mrb[4].mxu1 }
 0x18e   : > { %v484_v15 = vpop.f32.mrb[5].mxu0  ;;  %v564_v16 = vpop.f32.mrb[5].mxu1 }
 0x18f   : > { %v486_v17 = vpop.f32.mrb[6].mxu0  ;;  %v566_v18 = vpop.f32.mrb[6].mxu1 }
 0x190   : > { %v633_v19 = vpack.c.bf16 %v486_v17, %v482_v2  ;;  %v649_v20 = vpack.c.bf16 %v566_v18, %v562_v14  ;;  %v488_v21 = vpop.f32.mrb[7].mxu0  ;;  %v568_v22 = vpop.f32.mrb[7].mxu1 }
 0x191   : > { %v634_v23 = vpack.c.bf16 %v488_v21, %v484_v15  ;;  %v650_v24 = vpack.c.bf16 %v568_v22, %v564_v16 }
 0x192   : > { %665 = vst [vmem:[#allocation2 + $0x10] sm:$0xff] %v633_v19  ;;  %681 = vst [vmem:[#allocation2 + $0x90] sm:$0xff] %v649_v20 }
 0x193   : > { %666 = vst [vmem:[#allocation2 + $0x18] sm:$0xff] %v634_v23  ;;  %682 = vst [vmem:[#allocation2 + $0x98] sm:$0xff] %v650_v24 }
 0x195   : > { %v492_v25 = vpop.f32.mrb[8].mxu0  ;;  %v572_v26 = vpop.f32.mrb[8].mxu1 }
 0x196   : > { %v494_v27 = vpop.f32.mrb[9].mxu0  ;;  %v574_v28 = vpop.f32.mrb[9].mxu1 }
 0x197   : > { %v496_v29 = vpop.f32.mrb[10].mxu0  ;;  %v576_v30 = vpop.f32.mrb[10].mxu1 }
 0x198   : > { %v635_v31 = vpack.c.bf16 %v496_v29, %v492_v25  ;;  %v651_v32 = vpack.c.bf16 %v576_v30, %v572_v26  ;;  %v498_v33 = vpop.f32.mrb[11].mxu0  ;;  %v578_v34 = vpop.f32.mrb[11].mxu1 }
 0x199   : > { %v636_v35 = vpack.c.bf16 %v498_v33, %v494_v27  ;;  %v652_v36 = vpack.c.bf16 %v578_v34, %v574_v28 }
 0x19a   : > { %667 = vst [vmem:[#allocation2 + $0x20] sm:$0xff] %v635_v31  ;;  %683 = vst [vmem:[#allocation2 + $0xa0] sm:$0xff] %v651_v32 }
 0x19b   : > { %668 = vst [vmem:[#allocation2 + $0x28] sm:$0xff] %v636_v35  ;;  %684 = vst [vmem:[#allocation2 + $0xa8] sm:$0xff] %v652_v36 }
 0x19d   : > { %v502_v37 = vpop.f32.mrb[12].mxu0  ;;  %v582_v38 = vpop.f32.mrb[12].mxu1 }
 0x19e   : > { %v504_v39 = vpop.f32.mrb[13].mxu0  ;;  %v584_v40 = vpop.f32.mrb[13].mxu1 }
 0x19f   : > { %v506_v41 = vpop.f32.mrb[14].mxu0  ;;  %v586_v42 = vpop.f32.mrb[14].mxu1 }
 0x1a0   : > { %v637_v43 = vpack.c.bf16 %v506_v41, %v502_v37  ;;  %v653_v44 = vpack.c.bf16 %v586_v42, %v582_v38  ;;  %v508_v45 = vpop.f32.mrb[15].mxu0  ;;  %v588_v46 = vpop.f32.mrb[15].mxu1 }
 0x1a1   : > { %v638_v47 = vpack.c.bf16 %v508_v45, %v504_v39  ;;  %v654_v48 = vpack.c.bf16 %v588_v46, %v584_v40 }
 0x1a2   : > { %669 = vst [vmem:[#allocation2 + $0x30] sm:$0xff] %v637_v43  ;;  %685 = vst [vmem:[#allocation2 + $0xb0] sm:$0xff] %v653_v44 }
 0x1a3   : > { %670 = vst [vmem:[#allocation2 + $0x38] sm:$0xff] %v638_v47  ;;  %686 = vst [vmem:[#allocation2 + $0xb8] sm:$0xff] %v654_v48 }
 0x1a5   : > { %v512_v49 = vpop.f32.mrb[16].mxu0  ;;  %v592_v50 = vpop.f32.mrb[16].mxu1 }
 0x1a6   : > { %v514_v51 = vpop.f32.mrb[17].mxu0  ;;  %v594_v52 = vpop.f32.mrb[17].mxu1 }
 0x1a7   : > { %v516_v53 = vpop.f32.mrb[18].mxu0  ;;  %v596_v54 = vpop.f32.mrb[18].mxu1 }
 0x1a8   : > { %v639_v55 = vpack.c.bf16 %v516_v53, %v512_v49  ;;  %v655_v56 = vpack.c.bf16 %v596_v54, %v592_v50  ;;  %v518_v57 = vpop.f32.mrb[19].mxu0  ;;  %v598_v58 = vpop.f32.mrb[19].mxu1 }
 0x1a9   : > { %v640_v59 = vpack.c.bf16 %v518_v57, %v514_v51  ;;  %v656_v60 = vpack.c.bf16 %v598_v58, %v594_v52 }
 0x1aa   : > { %671 = vst [vmem:[#allocation2 + $0x40] sm:$0xff] %v639_v55  ;;  %687 = vst [vmem:[#allocation2 + $0xc0] sm:$0xff] %v655_v56 }
 0x1ab   : > { %672 = vst [vmem:[#allocation2 + $0x48] sm:$0xff] %v640_v59  ;;  %688 = vst [vmem:[#allocation2 + $0xc8] sm:$0xff] %v656_v60 }
 0x1ad   : > { %v522_v61 = vpop.f32.mrb[20].mxu0  ;;  %v602_v62 = vpop.f32.mrb[20].mxu1 }
 0x1ae   : > { %v524_v63 = vpop.f32.mrb[21].mxu0  ;;  %v604_v0 = vpop.f32.mrb[21].mxu1 }
 0x1af   : > { %v526_v1 = vpop.f32.mrb[22].mxu0  ;;  %v606_v3 = vpop.f32.mrb[22].mxu1 }
 0x1b0   : > { %v641_v4 = vpack.c.bf16 %v526_v1, %v522_v61  ;;  %v657_v5 = vpack.c.bf16 %v606_v3, %v602_v62  ;;  %v528_v6 = vpop.f32.mrb[23].mxu0  ;;  %v608_v7 = vpop.f32.mrb[23].mxu1 }
 0x1b1   : > { %v642_v8 = vpack.c.bf16 %v528_v6, %v524_v63  ;;  %v658_v9 = vpack.c.bf16 %v608_v7, %v604_v0 }
 0x1b2   : > { %673 = vst [vmem:[#allocation2 + $0x50] sm:$0xff] %v641_v4  ;;  %689 = vst [vmem:[#allocation2 + $0xd0] sm:$0xff] %v657_v5 }
 0x1b3   : > { %674 = vst [vmem:[#allocation2 + $0x58] sm:$0xff] %v642_v8  ;;  %690 = vst [vmem:[#allocation2 + $0xd8] sm:$0xff] %v658_v9 }
 0x1b5   : > { %v532_v10 = vpop.f32.mrb[24].mxu0  ;;  %v612_v11 = vpop.f32.mrb[24].mxu1 }
 0x1b6   : > { %v534_v12 = vpop.f32.mrb[25].mxu0  ;;  %v614_v13 = vpop.f32.mrb[25].mxu1 }
 0x1b7   : > { %v536_v2 = vpop.f32.mrb[26].mxu0  ;;  %v616_v14 = vpop.f32.mrb[26].mxu1 }
 0x1b8   : > { %v643_v15 = vpack.c.bf16 %v536_v2, %v532_v10  ;;  %v659_v16 = vpack.c.bf16 %v616_v14, %v612_v11  ;;  %v538_v17 = vpop.f32.mrb[27].mxu0  ;;  %v618_v18 = vpop.f32.mrb[27].mxu1 }
 0x1b9   : > { %v644_v19 = vpack.c.bf16 %v538_v17, %v534_v12  ;;  %v660_v20 = vpack.c.bf16 %v618_v18, %v614_v13 }
 0x1ba   : > { %675 = vst [vmem:[#allocation2 + $0x60] sm:$0xff] %v643_v15  ;;  %691 = vst [vmem:[#allocation2 + $0xe0] sm:$0xff] %v659_v16 }
 0x1bb   : > { %676 = vst [vmem:[#allocation2 + $0x68] sm:$0xff] %v644_v19  ;;  %692 = vst [vmem:[#allocation2 + $0xe8] sm:$0xff] %v660_v20 }
 0x1bd   : > { %v542_v21 = vpop.f32.mrb[28].mxu0  ;;  %v622_v22 = vpop.f32.mrb[28].mxu1 }
 0x1be   : > { %v544_v23 = vpop.f32.mrb[29].mxu0  ;;  %v624_v24 = vpop.f32.mrb[29].mxu1 }
 0x1bf   : > { %v546_v25 = vpop.f32.mrb[30].mxu0  ;;  %v626_v26 = vpop.f32.mrb[30].mxu1 }
 0x1c0   : > { %v645_v27 = vpack.c.bf16 %v546_v25, %v542_v21  ;;  %v661_v28 = vpack.c.bf16 %v626_v26, %v622_v22  ;;  %v548_v29 = vpop.f32.mrb[31].mxu0  ;;  %v628_v30 = vpop.f32.mrb[31].mxu1 }
 0x1c1   : > { %v646_v31 = vpack.c.bf16 %v548_v29, %v544_v23  ;;  %v662_v32 = vpack.c.bf16 %v628_v30, %v624_v24 }
 0x1c2   : > { %677 = vst [vmem:[#allocation2 + $0x70] sm:$0xff] %v645_v27  ;;  %693 = vst [vmem:[#allocation2 + $0xf0] sm:$0xff] %v661_v28 }
 0x1c3   : > { %678 = vst [vmem:[#allocation2 + $0x78] sm:$0xff] %v646_v31  ;;  %694 = vst [vmem:[#allocation2 + $0xf8] sm:$0xff] %v662_v32 }
 0x1c4 PF: > { %v737_v33 = vld [vmem:[#allocation2 + $0x80] sm:$0xff]  ;;  %v963_v34 = vld [vmem:[#allocation2 + $0x88] sm:$0xff]  ;;  %v738_v37 = vld [vmem:[#allocation2 + $0x90] sm:$0xff]  ;;  %s1357_s23 = sshll.u32 %s1930_s18, 7  ;;  %s1407_s28 = sshll.u32 %s1930_s18, 4 }
 0x1c5   : > { %v729_v35 = vld [vmem:[#allocation2] sm:$0xff]  ;;  %1414 = vmatprep.subr.bf16.mxu0 %v737_v33  ;;  %1478 = vmatprep.subr.bf16.mxu1 %v963_v34  ;;  %v955_v36 = vld [vmem:[#allocation2 + $0x8] sm:$0xff]  ;;  %v964_v38 = vld [vmem:[#allocation2 + $0x98] sm:$0xff]  ;;  %s2315_s10 = scalar_lea.vmem %s2219_s17, %s1357_s23 [#allocation6]  ;;  %s1408_s24 = sshll.u32 %s1934_s19, 5 }
 0x1c6   : > { %1415 = vmatpush3.bf16.msra.mxu0 %v729_v35  ;;  %1479 = vmatpush3.bf16.msra.mxu1 %v955_v36  ;;  %v730_v39 = vld [vmem:[#allocation2 + $0x10] sm:$0xff]  ;;  %v956_v40 = vld [vmem:[#allocation2 + $0x18] sm:$0xff]  ;;  %v739_v41 = vld [vmem:[#allocation2 + $0xa0] sm:$0xff]  ;;  %s1193_s25 = sadd.s32 %s1408_s24, %s1407_s28  ;;  %s2469_s18 = sld [smem:[#allocation24_spill]] }
 0x1c7   : > { %1416 = vmatprep.subr.bf16.mxu0 %v738_v37  ;;  %1480 = vmatprep.subr.bf16.mxu1 %v964_v38  ;;  %v965_v42 = vld [vmem:[#allocation2 + $0xa8] sm:$0xff]  ;;  %v731_v43 = vld [vmem:[#allocation2 + $0x20] sm:$0xff]  ;;  %v740_v45 = vld [vmem:[#allocation2 + $0xb0] sm:$0xff]  ;;  %s1409_s19 = sshll.u32 %s1193_s25, 7  ;;  %s1196_s11 = sshll.u32 %s2230_s6, 4  ;;  %s2355_s11 = int_to_ptr.vmem [resolvable:$true] %s1196_s11 }
 0x1c8   : > { %v957_v44 = vld [vmem:[#allocation2 + $0x28] sm:$0xff]  ;;  %v966_v46 = vld [vmem:[#allocation2 + $0xb8] sm:$0xff]  ;;  %v732_v47 = vld [vmem:[#allocation2 + $0x30] sm:$0xff]  ;;  %s2470_s20 = sld [smem:[#allocation27_spill]]  ;;  %s1181_s26 = scalar_lea.sflag [#allocation5], %s2207_s12 }
 0x1c9   : > { %v958_v48 = vld [vmem:[#allocation2 + $0x38] sm:$0xff]  ;;  %v741_v49 = vld [vmem:[#allocation2 + $0xc0] sm:$0xff]  ;;  %v967_v51 = vld [vmem:[#allocation2 + $0xc8] sm:$0xff]  ;;  %s1816_s5 = scalar_lea.vmem %s2355_s11, 2048 }
 0x1ca   : > { %1417 = vmatpush3.bf16.msra.mxu0 %v730_v39  ;;  %1481 = vmatpush3.bf16.msra.mxu1 %v956_v40  ;;  %v1714_v50 = vld [vmem:[%s2211_s3 + $0x4] ss:$8 sps:$4 sm:$0xff]   ;;  %v742_v55 = vld [vmem:[#allocation2 + $0xd0] sm:$0xff]  ;;  %v968_v56 = vld [vmem:[#allocation2 + $0xd8] sm:$0xff]  ;;  %p1817_p2 = scmp.ne.s32.totalorder %s2355_s11, %s1816_s5 }
 0x1cb   : > { %1418 = vmatprep.subr.bf16.mxu0 %v739_v41  ;;  %1482 = vmatprep.subr.bf16.mxu1 %v965_v42  ;;  %v1717_v52 = vld [vmem:[%s2211_s3 + $0x84] ss:$8 sps:$4 sm:$0xff]   ;;  %v734_v57 = vld [vmem:[#allocation2 + $0x50] sm:$0xff]  ;;  %v960_v58 = vld [vmem:[#allocation2 + $0x58] sm:$0xff] }
 0x1cc   : > { %857 = vmatprep.mubr.bf16.mxu0 %v1714_v50  ;;  %v733_v53 = vld [vmem:[#allocation2 + $0x40] sm:$0xff]  ;;  %v959_v54 = vld [vmem:[#allocation2 + $0x48] sm:$0xff]  ;;  %1083 = vmatprep.mubr.bf16.mxu1 %v1717_v52  ;;  %v744_v63 = vld [vmem:[#allocation2 + $0xf0] sm:$0xff]  ;;  %p2472_p8 = scmp.ne.s32.totalorder %s2469_s18, 0 }
 0x1cd   : > { %v743_v59 = vld [vmem:[#allocation2 + $0xe0] sm:$0xff]  ;;  %v969_v60 = vld [vmem:[#allocation2 + $0xe8] sm:$0xff]  ;;  %v970_v0 = vld [vmem:[#allocation2 + $0xf8] sm:$0xff] }
 0x1ce   : > { %1419 = vmatpush3.bf16.msra.mxu0 %v731_v43  ;;  %1483 = vmatpush3.bf16.msra.mxu1 %v957_v44  ;;  %v735_v61 = vld [vmem:[#allocation2 + $0x60] sm:$0xff]  ;;  %v961_v62 = vld [vmem:[#allocation2 + $0x68] sm:$0xff]  ;;  %v736_v1 = vld [vmem:[#allocation2 + $0x70] sm:$0xff]  ;;  %s2471_s30 = smov %s2470_s20  ;;  %s2353_s15 = scalar_lea.hbm %s2470_s20, %s1409_s19 }
 0x1cf   : > { %1420 = vmatprep.subr.bf16.mxu0 %v740_v45  ;;  %1484 = vmatprep.subr.bf16.mxu1 %v966_v46  ;;  %v962_v3 = vld [vmem:[#allocation2 + $0x78] sm:$0xff]  ;;  %v1712_v4 = vld [vmem:[%s2211_s3] ss:$8 sps:$4 sm:$0xff]   ;;  %v1724_v10 = vld [vmem:[%s2211_s3 + $0x24] ss:$8 sps:$4 sm:$0xff]   ;;  %p1818_p9 = pnand %p1817_p2, %p2472_p8 }
 0x1d0   : > { %v1715_v5 = vld [vmem:[%s2211_s3 + $0x80] ss:$8 sps:$4 sm:$0xff]   ;;  %v1718_v6 = vld [vmem:[%s2211_s3 + $0x14] ss:$8 sps:$4 sm:$0xff]   ;;  %v1722_v8 = vld [vmem:[%s2211_s3 + $0x10] ss:$8 sps:$4 sm:$0xff]  }
 0x1d1   : > { %v1720_v7 = vld [vmem:[%s2211_s3 + $0x94] ss:$8 sps:$4 sm:$0xff]   ;;  %v1723_v9 = vld [vmem:[%s2211_s3 + $0x90] ss:$8 sps:$4 sm:$0xff]   ;;  %v1726_v11 = vld [vmem:[%s2211_s3 + $0xa4] ss:$8 sps:$4 sm:$0xff]   ;;  %p1819_p5 = pneg %p1818_p9 }
 0x1d2   : > { %1421 = vmatpush3.bf16.msra.mxu0 %v732_v47  ;;  %1485 = vmatpush3.bf16.msra.mxu1 %v958_v48  ;;  %v1728_v12 = vld [vmem:[%s2211_s3 + $0x20] ss:$8 sps:$4 sm:$0xff]   ;;  %v1730_v2 = vld [vmem:[%s2211_s3 + $0x34] ss:$8 sps:$4 sm:$0xff]   ;;  %v1734_v15 = vld [vmem:[%s2211_s3 + $0x30] ss:$8 sps:$4 sm:$0xff]  }
 0x1d3   : > { %1422 = vmatprep.subr.bf16.mxu0 %v741_v49  ;;  %1486 = vmatprep.subr.bf16.mxu1 %v967_v51  ;;  %v1729_v13 = vld [vmem:[%s2211_s3 + $0xa0] ss:$8 sps:$4 sm:$0xff]   ;;  %v1732_v14 = vld [vmem:[%s2211_s3 + $0xb4] ss:$8 sps:$4 sm:$0xff]   ;;  %v1735_v16 = vld [vmem:[%s2211_s3 + $0xb0] ss:$8 sps:$4 sm:$0xff]  }
 0x1d4   : > { %v1736_v17 = vld [vmem:[%s2211_s3 + $0x44] ss:$8 sps:$4 sm:$0xff]   ;;  %v1740_v19 = vld [vmem:[%s2211_s3 + $0x40] ss:$8 sps:$4 sm:$0xff]   ;;  %v1742_v21 = vld [vmem:[%s2211_s3 + $0x54] ss:$8 sps:$4 sm:$0xff]  }
 0x1d5   : > { %v1738_v18 = vld [vmem:[%s2211_s3 + $0xc4] ss:$8 sps:$4 sm:$0xff]   ;;  %v1741_v20 = vld [vmem:[%s2211_s3 + $0xc0] ss:$8 sps:$4 sm:$0xff]   ;;  %v1744_v22 = vld [vmem:[%s2211_s3 + $0xd4] ss:$8 sps:$4 sm:$0xff]  }
 0x1d6   : > { %1423 = vmatpush3.bf16.msra.mxu0 %v733_v53  ;;  %1487 = vmatpush3.bf16.msra.mxu1 %v959_v54  ;;  %v1746_v23 = vld [vmem:[%s2211_s3 + $0x50] ss:$8 sps:$4 sm:$0xff]   ;;  %v1748_v25 = vld [vmem:[%s2211_s3 + $0x64] ss:$8 sps:$4 sm:$0xff]   ;;  %v1752_v27 = vld [vmem:[%s2211_s3 + $0x60] ss:$8 sps:$4 sm:$0xff]  }
 0x1d7   : > { %1424 = vmatprep.subr.bf16.mxu0 %v742_v55  ;;  %1488 = vmatprep.subr.bf16.mxu1 %v968_v56  ;;  %v1747_v24 = vld [vmem:[%s2211_s3 + $0xd0] ss:$8 sps:$4 sm:$0xff]   ;;  %v1750_v26 = vld [vmem:[%s2211_s3 + $0xe4] ss:$8 sps:$4 sm:$0xff]   ;;  %v1753_v28 = vld [vmem:[%s2211_s3 + $0xe0] ss:$8 sps:$4 sm:$0xff]  }
 0x1d8   : > { %v1754_v29 = vld [vmem:[%s2211_s3 + $0x74] ss:$8 sps:$4 sm:$0xff]   ;;  %v1758_v31 = vld [vmem:[%s2211_s3 + $0x70] ss:$8 sps:$4 sm:$0xff]   ;;  %v697_v35 = vld [vmem:[%s2315_s10] sm:$0xff] }
 0x1d9   : > { %v1756_v30 = vld [vmem:[%s2211_s3 + $0xf4] ss:$8 sps:$4 sm:$0xff]   ;;  %v1759_v32 = vld [vmem:[%s2211_s3 + $0xf0] ss:$8 sps:$4 sm:$0xff]   ;;  %v698_v42 = vld [vmem:[%s2315_s10 + $0x8] sm:$0xff]  ;;  %s1961_s3 = smov [#allocation9]  }
 0x1da   : > { %1425 = vmatpush3.bf16.msra.mxu0 %v734_v57  ;;  %1489 = vmatpush3.bf16.msra.mxu1 %v960_v58  ;;  %v699_v53 = vld [vmem:[%s2315_s10 + $0x10] sm:$0xff]  ;;  %s1820_s7 = sshll.u32 %s1961_s3, 4  ;;  %s1821_s7 = int_to_ptr.vmem [resolvable:$false] %s1820_s7 }
 0x1db   : > { %1426 = vmatprep.subr.bf16.mxu0 %v743_v59  ;;  %1490 = vmatprep.subr.bf16.mxu1 %v969_v60  ;;  %v700_v60 = vld [vmem:[%s2315_s10 + $0x18] sm:$0xff]  ;;  %s1822_s27 = scalar_lea.vmem %s1821_s7, 4096  ;;  %p1823_p3 = scmp.lt.s32.totalorder %s2355_s11, %s1821_s7 }
 0x1dc   : > { %p1824_p6 = scmp.lt.s32.totalorder %s1822_s27, %s1816_s5 }
 0x1de   : > { %1427 = vmatpush3.bf16.msra.mxu0 %v735_v61  ;;  %1491 = vmatpush3.bf16.msra.mxu1 %v961_v62  ;;  %p1825_p12 = por %p1824_p6, %p1823_p3 }
 0x1df   : > { %1428 = vmatprep.subr.bf16.mxu0 %v744_v63  ;;  %1492 = vmatprep.subr.bf16.mxu1 %v970_v0 }
 0x1e0   : > { %p1826_p10 = pnand %p1825_p12, %p1819_p5 }
 0x1e2   : > { %1429 = vmatpush3.bf16.msra.mxu0 %v736_v1  ;;  %1493 = vmatpush3.bf16.msra.mxu1 %v962_v3 }
 0x1e5   : > { %858 = vmatmul.mubr.bf16.vlgmr.msra.gmra.mrb[0].mxu0 %v1712_v4  ;;  %1084 = vmatmul.mubr.bf16.vlgmr.msra.gmra.mrb[0].mxu1 %v1715_v5 }
 0x1e6   : > { %865 = vmatprep.mubr.bf16.mxu0 %v1718_v6  ;;  %1091 = vmatprep.mubr.bf16.mxu1 %v1720_v7 }
 0x1ed   : > { %866 = vmatmul.mubr.bf16.gmra.mrb[4].mxu0 %v1722_v8  ;;  %1092 = vmatmul.mubr.bf16.gmra.mrb[4].mxu1 %v1723_v9  ;;  %v701_v8 = vld [vmem:[%s2315_s10 + $0x20] sm:$0xff] }
 0x1ee   : > { %873 = vmatprep.mubr.bf16.mxu0 %v1724_v10  ;;  %1099 = vmatprep.mubr.bf16.mxu1 %v1726_v11 }
 0x1f5   : > { %874 = vmatmul.mubr.bf16.gmra.mrb[8].mxu0 %v1728_v12  ;;  %1100 = vmatmul.mubr.bf16.gmra.mrb[8].mxu1 %v1729_v13 }
 0x1f6   : > { %881 = vmatprep.mubr.bf16.mxu0 %v1730_v2  ;;  %1107 = vmatprep.mubr.bf16.mxu1 %v1732_v14  ;;  %v702_v14 = vld [vmem:[%s2315_s10 + $0x28] sm:$0xff] }
 0x1fd   : > { %882 = vmatmul.mubr.bf16.gmra.mrb[12].mxu0 %v1734_v15  ;;  %1108 = vmatmul.mubr.bf16.gmra.mrb[12].mxu1 %v1735_v16 }
 0x1fe   : > { %889 = vmatprep.mubr.bf16.mxu0 %v1736_v17  ;;  %1115 = vmatprep.mubr.bf16.mxu1 %v1738_v18 }
 0x205   : > { %890 = vmatmul.mubr.bf16.gmra.mrb[16].mxu0 %v1740_v19  ;;  %1116 = vmatmul.mubr.bf16.gmra.mrb[16].mxu1 %v1741_v20 }
 0x206   : > { %897 = vmatprep.mubr.bf16.mxu0 %v1742_v21  ;;  %1123 = vmatprep.mubr.bf16.mxu1 %v1744_v22 }
 0x20d   : > { %898 = vmatmul.mubr.bf16.gmra.mrb[20].mxu0 %v1746_v23  ;;  %1124 = vmatmul.mubr.bf16.gmra.mrb[20].mxu1 %v1747_v24 }
 0x20e   : > { %905 = vmatprep.mubr.bf16.mxu0 %v1748_v25  ;;  %1131 = vmatprep.mubr.bf16.mxu1 %v1750_v26  ;;  %v703_v25 = vld [vmem:[%s2315_s10 + $0x30] sm:$0xff] }
 0x215   : > { %906 = vmatmul.mubr.bf16.gmra.mrb[24].mxu0 %v1752_v27  ;;  %1132 = vmatmul.mubr.bf16.gmra.mrb[24].mxu1 %v1753_v28 }
 0x216   : > { %913 = vmatprep.mubr.bf16.mxu0 %v1754_v29  ;;  %1139 = vmatprep.mubr.bf16.mxu1 %v1756_v30 }
 0x21d   : > { %914 = vmatmul.mubr.bf16.gmra.mrb[28].mxu0 %v1758_v31  ;;  %1140 = vmatmul.mubr.bf16.gmra.mrb[28].mxu1 %v1759_v32  ;;  %v704_v32 = vld [vmem:[%s2315_s10 + $0x38] sm:$0xff] }
 0x2b8   : > { %v1430_v33 = vpop.f32.mrb[0].mxu0  ;;  %v1494_v34 = vpop.f32.mrb[0].mxu1 }
 0x2b9   : > { %v1431_v36 = vpop.f32.mrb[1].mxu0  ;;  %v1495_v37 = vpop.f32.mrb[1].mxu1 }
 0x2ba   : > { %v1432_v38 = vadd.f32 %v1431_v36, %v1430_v33  ;;  %v1496_v39 = vadd.f32 %v1495_v37, %v1494_v34  ;;  %v1433_v40 = vpop.f32.mrb[2].mxu0  ;;  %v1497_v41 = vpop.f32.mrb[2].mxu1 }
 0x2bb   : > { %v1434_v43 = vpop.f32.mrb[3].mxu0  ;;  %v1498_v44 = vpop.f32.mrb[3].mxu1 }
 0x2bc   : > { %v922_v45 = vadd.f32 %v1432_v38, %v697_v35  ;;  %v1435_v46 = vadd.f32 %v1434_v43, %v1433_v40  ;;  %v1499_v47 = vadd.f32 %v1498_v44, %v1497_v41  ;;  %v705_v43 = vld [vmem:[%s2315_s10 + $0x40] sm:$0xff] }
 0x2be   : > { %v1148_v48 = vadd.f32 %v1496_v39, %v922_v45  ;;  %v923_v49 = vadd.f32 %v1435_v46, %v698_v42 }
 0x2c0   : > { %1164 = vst [vmem:[%s2230_s6] sm:$0xff] %v1148_v48  ;;  %v1149_v50 = vadd.f32 %v1499_v47, %v923_v49  ;;  %v1436_v51 = vpop.f32.mrb[4].mxu0  ;;  %v1500_v52 = vpop.f32.mrb[4].mxu1 }
 0x2c1   : > { %v1437_v54 = vpop.f32.mrb[5].mxu0  ;;  %v1501_v55 = vpop.f32.mrb[5].mxu1 }
 0x2c2   : > { %1165 = vst [vmem:[%s2230_s6 + $0x8] sm:$0xff] %v1149_v50  ;;  %v1438_v56 = vadd.f32 %v1437_v54, %v1436_v51  ;;  %v1502_v57 = vadd.f32 %v1501_v55, %v1500_v52  ;;  %v1439_v58 = vpop.f32.mrb[6].mxu0  ;;  %v1503_v59 = vpop.f32.mrb[6].mxu1  ;;  %v706_v50 = vld [vmem:[%s2315_s10 + $0x48] sm:$0xff] }
 0x2c3   : > { %v1440_v61 = vpop.f32.mrb[7].mxu0  ;;  %v1504_v62 = vpop.f32.mrb[7].mxu1 }
 0x2c4   : > { %v924_v63 = vadd.f32 %v1438_v56, %v699_v53  ;;  %v1441_v0 = vadd.f32 %v1440_v61, %v1439_v58  ;;  %v1505_v1 = vadd.f32 %v1504_v62, %v1503_v59  ;;  %v707_v61 = vld [vmem:[%s2315_s10 + $0x50] sm:$0xff] }
 0x2c6   : > { %v1150_v3 = vadd.f32 %v1502_v57, %v924_v63  ;;  %v925_v4 = vadd.f32 %v1441_v0, %v700_v60 }
 0x2c8   : > { %1166 = vst [vmem:[%s2230_s6 + $0x10] sm:$0xff] %v1150_v3  ;;  %v1151_v5 = vadd.f32 %v1505_v1, %v925_v4  ;;  %v1442_v6 = vpop.f32.mrb[8].mxu0  ;;  %v1506_v7 = vpop.f32.mrb[8].mxu1 }
 0x2c9   : > { %v1443_v9 = vpop.f32.mrb[9].mxu0  ;;  %v1507_v10 = vpop.f32.mrb[9].mxu1 }
 0x2ca   : > { %1167 = vst [vmem:[%s2230_s6 + $0x18] sm:$0xff] %v1151_v5  ;;  %v1444_v11 = vadd.f32 %v1443_v9, %v1442_v6  ;;  %v1508_v12 = vadd.f32 %v1507_v10, %v1506_v7  ;;  %v1445_v13 = vpop.f32.mrb[10].mxu0  ;;  %v1509_v2 = vpop.f32.mrb[10].mxu1  ;;  %v708_v5 = vld [vmem:[%s2315_s10 + $0x58] sm:$0xff] }
 0x2cb   : > { %v1446_v15 = vpop.f32.mrb[11].mxu0  ;;  %v1510_v16 = vpop.f32.mrb[11].mxu1 }
 0x2cc   : > { %v926_v17 = vadd.f32 %v1444_v11, %v701_v8  ;;  %v1447_v18 = vadd.f32 %v1446_v15, %v1445_v13  ;;  %v1511_v19 = vadd.f32 %v1510_v16, %v1509_v2  ;;  %v709_v15 = vld [vmem:[%s2315_s10 + $0x60] sm:$0xff] }
 0x2ce   : > { %v1152_v20 = vadd.f32 %v1508_v12, %v926_v17  ;;  %v927_v21 = vadd.f32 %v1447_v18, %v702_v14 }
 0x2d0   : > { %1168 = vst [vmem:[%s2230_s6 + $0x20] sm:$0xff] %v1152_v20  ;;  %v1153_v22 = vadd.f32 %v1511_v19, %v927_v21  ;;  %v1448_v23 = vpop.f32.mrb[12].mxu0  ;;  %v1512_v24 = vpop.f32.mrb[12].mxu1 }
 0x2d1   : > { %v1449_v26 = vpop.f32.mrb[13].mxu0  ;;  %v1513_v27 = vpop.f32.mrb[13].mxu1 }
 0x2d2   : > { %1169 = vst [vmem:[%s2230_s6 + $0x28] sm:$0xff] %v1153_v22  ;;  %v1450_v28 = vadd.f32 %v1449_v26, %v1448_v23  ;;  %v1514_v29 = vadd.f32 %v1513_v27, %v1512_v24  ;;  %v1451_v30 = vpop.f32.mrb[14].mxu0  ;;  %v1515_v31 = vpop.f32.mrb[14].mxu1  ;;  %v710_v22 = vld [vmem:[%s2315_s10 + $0x68] sm:$0xff] }
 0x2d3   : > { %v1452_v33 = vpop.f32.mrb[15].mxu0  ;;  %v1516_v34 = vpop.f32.mrb[15].mxu1 }
 0x2d4   : > { %v928_v35 = vadd.f32 %v1450_v28, %v703_v25  ;;  %v1453_v36 = vadd.f32 %v1452_v33, %v1451_v30  ;;  %v1517_v37 = vadd.f32 %v1516_v34, %v1515_v31  ;;  %v711_v33 = vld [vmem:[%s2315_s10 + $0x70] sm:$0xff] }
 0x2d6   : > { %v1154_v38 = vadd.f32 %v1514_v29, %v928_v35  ;;  %v929_v39 = vadd.f32 %v1453_v36, %v704_v32 }
 0x2d8   : > { %1170 = vst [vmem:[%s2230_s6 + $0x30] sm:$0xff] %v1154_v38  ;;  %v1155_v40 = vadd.f32 %v1517_v37, %v929_v39  ;;  %v1454_v41 = vpop.f32.mrb[16].mxu0  ;;  %v1518_v42 = vpop.f32.mrb[16].mxu1 }
 0x2d9   : > { %v1455_v44 = vpop.f32.mrb[17].mxu0  ;;  %v1519_v45 = vpop.f32.mrb[17].mxu1 }
 0x2da   : > { %1171 = vst [vmem:[%s2230_s6 + $0x38] sm:$0xff] %v1155_v40  ;;  %v1456_v46 = vadd.f32 %v1455_v44, %v1454_v41  ;;  %v1520_v47 = vadd.f32 %v1519_v45, %v1518_v42  ;;  %v1457_v48 = vpop.f32.mrb[18].mxu0  ;;  %v1521_v49 = vpop.f32.mrb[18].mxu1  ;;  %v712_v40 = vld [vmem:[%s2315_s10 + $0x78] sm:$0xff] }
 0x2db   : > { %v1458_v51 = vpop.f32.mrb[19].mxu0  ;;  %v1522_v52 = vpop.f32.mrb[19].mxu1 }
 0x2dc   : > { %v930_v53 = vadd.f32 %v1456_v46, %v705_v43  ;;  %v1459_v54 = vadd.f32 %v1458_v51, %v1457_v48  ;;  %v1523_v55 = vadd.f32 %v1522_v52, %v1521_v49 }
 0x2de   : > { %v1156_v56 = vadd.f32 %v1520_v47, %v930_v53  ;;  %v931_v57 = vadd.f32 %v1459_v54, %v706_v50 }
 0x2e0   : > { %1172 = vst [vmem:[%s2230_s6 + $0x40] sm:$0xff] %v1156_v56  ;;  %v1157_v58 = vadd.f32 %v1523_v55, %v931_v57  ;;  %v1460_v59 = vpop.f32.mrb[20].mxu0  ;;  %v1524_v60 = vpop.f32.mrb[20].mxu1 }
 0x2e1   : > { %v1461_v62 = vpop.f32.mrb[21].mxu0  ;;  %v1525_v63 = vpop.f32.mrb[21].mxu1 }
 0x2e2   : > { %1173 = vst [vmem:[%s2230_s6 + $0x48] sm:$0xff] %v1157_v58  ;;  %v1462_v0 = vadd.f32 %v1461_v62, %v1460_v59  ;;  %v1526_v1 = vadd.f32 %v1525_v63, %v1524_v60  ;;  %v1463_v3 = vpop.f32.mrb[22].mxu0  ;;  %v1527_v4 = vpop.f32.mrb[22].mxu1 }
 0x2e3   : > { %v1464_v6 = vpop.f32.mrb[23].mxu0  ;;  %v1528_v7 = vpop.f32.mrb[23].mxu1 }
 0x2e4   : > { %v932_v8 = vadd.f32 %v1462_v0, %v707_v61  ;;  %v1465_v9 = vadd.f32 %v1464_v6, %v1463_v3  ;;  %v1529_v10 = vadd.f32 %v1528_v7, %v1527_v4 }
 0x2e6   : > { %v1158_v11 = vadd.f32 %v1526_v1, %v932_v8  ;;  %v933_v12 = vadd.f32 %v1465_v9, %v708_v5 }
 0x2e8   : > { %1174 = vst [vmem:[%s2230_s6 + $0x50] sm:$0xff] %v1158_v11  ;;  %v1159_v13 = vadd.f32 %v1529_v10, %v933_v12  ;;  %v1466_v2 = vpop.f32.mrb[24].mxu0  ;;  %v1530_v14 = vpop.f32.mrb[24].mxu1 }
 0x2e9   : > { %v1467_v16 = vpop.f32.mrb[25].mxu0  ;;  %v1531_v17 = vpop.f32.mrb[25].mxu1 }
 0x2ea   : > { %1175 = vst [vmem:[%s2230_s6 + $0x58] sm:$0xff] %v1159_v13  ;;  %v1468_v18 = vadd.f32 %v1467_v16, %v1466_v2  ;;  %v1532_v19 = vadd.f32 %v1531_v17, %v1530_v14  ;;  %v1469_v20 = vpop.f32.mrb[26].mxu0  ;;  %v1533_v21 = vpop.f32.mrb[26].mxu1 }
 0x2eb   : > { %v1470_v23 = vpop.f32.mrb[27].mxu0  ;;  %v1534_v24 = vpop.f32.mrb[27].mxu1 }
 0x2ec   : > { %v934_v25 = vadd.f32 %v1468_v18, %v709_v15  ;;  %v1471_v26 = vadd.f32 %v1470_v23, %v1469_v20  ;;  %v1535_v27 = vadd.f32 %v1534_v24, %v1533_v21 }
 0x2ee   : > { %v1160_v28 = vadd.f32 %v1532_v19, %v934_v25  ;;  %v935_v29 = vadd.f32 %v1471_v26, %v710_v22 }
 0x2f0   : > { %1176 = vst [vmem:[%s2230_s6 + $0x60] sm:$0xff] %v1160_v28  ;;  %v1161_v30 = vadd.f32 %v1535_v27, %v935_v29  ;;  %v1472_v31 = vpop.f32.mrb[28].mxu0  ;;  %v1536_v32 = vpop.f32.mrb[28].mxu1 }
 0x2f1   : > { %v1473_v34 = vpop.f32.mrb[29].mxu0  ;;  %v1537_v35 = vpop.f32.mrb[29].mxu1 }
 0x2f2   : > { %1177 = vst [vmem:[%s2230_s6 + $0x68] sm:$0xff] %v1161_v30  ;;  %v1474_v36 = vadd.f32 %v1473_v34, %v1472_v31  ;;  %v1538_v37 = vadd.f32 %v1537_v35, %v1536_v32  ;;  %v1475_v38 = vpop.f32.mrb[30].mxu0  ;;  %v1539_v39 = vpop.f32.mrb[30].mxu1 }
 0x2f3   : > { %v1476_v41 = vpop.f32.mrb[31].mxu0  ;;  %v1540_v42 = vpop.f32.mrb[31].mxu1 }
 0x2f4   : > { %v936_v43 = vadd.f32 %v1474_v36, %v711_v33  ;;  %v1477_v44 = vadd.f32 %v1476_v41, %v1475_v38  ;;  %v1541_v45 = vadd.f32 %v1540_v42, %v1539_v39 }
 0x2f6   : > { %v1162_v46 = vadd.f32 %v1538_v37, %v936_v43  ;;  %v937_v47 = vadd.f32 %v1477_v44, %v712_v40 }
 0x2f8   : > { %1178 = vst [vmem:[%s2230_s6 + $0x70] sm:$0xff] %v1162_v46  ;;  %v1163_v48 = vadd.f32 %v1541_v45, %v937_v47 }
 0x2fa   : > { %1179 = vst [vmem:[%s2230_s6 + $0x78] sm:$0xff] %v1163_v48 }
 0x2fb   : > { %1829 = shalt.err (!%p1826_p10)
}
 0x2fc   : > { %s1830_s8 = scalar_lea.hbm %s2353_s15, 2048  ;;  %s1834_s4 = scalar_lea.hbm %s2471_s30, 8192 }
 0x2fd   : > { %p1831_p13 = scmp.ne.s32.totalorder %s2353_s15, %s1830_s8  ;;  %p1835_p11 = scmp.lt.u32.totalorder %s2353_s15, %s2471_s30 }
 0x2fe   : > { %p1836_p0 = scmp.lt.u32.totalorder %s1834_s4, %s1830_s8  ;;  %p1838_p2 = scmp.lt.u32.totalorder %s1830_s8, %s2353_s15 }
 0x2ff   : > { %p1832_p1 = pnand %p1831_p13, %p2472_p8 }
 0x300   : > { %p1837_p4 = por %p1836_p0, %p1835_p11 }
 0x301   : > { %p1833_p7 = pneg %p1832_p1 }
 0x302   : > { %p1839_p9 = por %p1838_p2, %p1837_p4 }
 0x304   : > { %p1840_p5 = pnand %p1839_p9, %p1833_p7 }
 0x306   : > { %1843 = shalt.err (!%p1840_p5)
}
 0x307   : > { %s1962_s10 = smov 128   ;;  %s1963_s28 = smov 8  }
 0x308   : > { %1573 = dma.vmem_to_hbm [thread:$0]  (%p2472_p8), %s2355_s11, 2048, %s2353_s15, %s1181_s26, %s1962_s10, %s1962_s10, %s1963_s28  }
 0x309 PF: > { %s2473_s24 = sld [smem:[#allocation17_spill]]  ;;  %s2474_s25 = sld [smem:[#allocation25_spill]] }
 0x30a   : > { %p1585_p3 = scmp.ge.s32.totalorder %s1946_s22, 2 }
 0x30f   : > { %s1211_s19 = sand.u32 1, %s2473_s24   ;;  %p2475_p6 = scmp.ne.s32.totalorder %s2474_s25, 0 }
 0x310   : > { %s1212_s9 = scalar_lea.sflag [#allocation5], %s1211_s19 }
 0x311   : > { %p1580_p12 = pnand %p1585_p3, %p2475_p6 }
 0x313   : > { %1901 = dma.done.wait (!%p1580_p12), %s1212_s9, 2048  }
 0x314   : > { %1903 = vsyncadd (!%p1580_p12), %s1212_s9, 4294965248  ;;  %s22_s22 = sadd.s32 1, %s1946_s22   ;;  %s2476_s2 = sld [smem:[#allocation22_spill]] }
 0x315   : > { %p19_p10 = scmp.ge.s32.totalorder %s22_s22, 6   ;;  %s2477_s18 = sld [smem:[#allocation18_spill]] }
 0x316   : > { %s2478_s17 = sld [smem:[#allocation23_spill]]  ;;  %s2479_s11 = sld [smem:[#allocation19_spill]] }
 0x317   : > { %s2480_s20 = sld [smem:[#allocation20_spill]]  ;;  %s2481_s26 = sld [smem:[#allocation21_spill]] }
 0x318   : > { %s2482_s12 = smov %s1910_s13  ;;  %s2483_s13 = smov %s1914_s14 }
 0x319   : > { %s2485_s15 = smov %s1922_s16  ;;  %s2488_s19 = smov %s1942_s21 }
 0x31a   : > { %s2484_s14 = smov %s2476_s2  ;;  %21 = sbr.rel (!%p19_p10) target bundleno = 14 (0xe), region = 105 }
 0x31b   : > { %s2486_s16 = smov %s2477_s18 }
 0x31c   : > { %s2487_s18 = smov %s2479_s11 }
 0x31d   : > { %s2489_s21 = smov %s2481_s26 }
 0x321   :  { %1217 = vsyncpa [#allocation4], 1 }
 0x322   :  { %1219 = vsyncpa [#allocation4 + $0x1], 1 }
 0x323   :  { %1220 = vsyncpa [#allocation7], 1 }
 0x324   :  { %1222 = vsyncpa [#allocation7 + $0x1], 1 }
 0x325   :  { %1223 = vsyncpa [#allocation5], 1 }
 0x326   :  { %1225 = vsyncpa [#allocation5 + $0x1], 1 }

</bundles_post_ra>
